<compile_context>
chip_gen: v5e
topology: v5e:2x2
jax: 0.10.0
libtpu: 0.0.40
codegen_flags: <defaults>
</compile_context>

<pallas_src>
import functools

import jax
import jax.numpy as jnp
from jax import lax
from jax.experimental import pallas as pl
from jax.experimental.pallas import tpu as pltpu


def _round_up(x, m):
    return ((x + m - 1) // m) * m


def _default_num_cores():
    """Best-effort TensorCores-per-chip count (v7x / megacore -> 2, else 1)."""
    try:
        dev = jax.devices()[0]
    except Exception:
        return 1
    n = getattr(dev, "num_cores", None)
    if isinstance(n, int) and n >= 1:
        return min(int(n), 2)
    kind = str(getattr(dev, "device_kind", "")).lower()
    if any(tag in kind for tag in ("v7", "v5p", "v4")):
        return 2
    return 1


def _vmem_estimate(tile_b, feat_dim, num_classes, feat_itemsize, centers_itemsize):
    """Rough per-core VMEM working-set estimate (bytes) for one grid step."""
    feat_blocks = 2 * tile_b * feat_dim * feat_itemsize            # double-buffered feat tiles
    center_blocks = 2 * num_classes * feat_dim * centers_itemsize  # resident centers (2 bufs)
    label_blocks = 2 * tile_b * 128 * 4                            # (TB,1) i32, lane-padded
    f32_temps = 5 * tile_b * feat_dim * 4                          # feat/centers_batch/diff/sq/mask
    onehot = tile_b * num_classes * 4
    acc = 8 * feat_dim * 4
    return feat_blocks + center_blocks + label_blocks + f32_temps + onehot + acc


def _center_loss_kernel(label_ref, feat_ref, centers_ref, out_ref, acc_ref, *,
                        n_tiles, tiles_per_core, masked, needs_gate):
    # label_ref:   VMEM (TB, 1)    int32  (padded rows carry the -1 sentinel)
    # feat_ref:    VMEM (TB, D)    source dtype (ragged last block: pad rows = garbage)
    # centers_ref: VMEM (C,  D)    source dtype (resident; constant block index)
    # out_ref:     VMEM (1, 1, D)  f32    per-core partial sums (written on last step)
    # acc_ref:     VMEM (1, D)     f32    running per-lane accumulator for this core
    c = pl.program_id(0)
    i = pl.program_id(1)
    tb = feat_ref.shape[0]
    num_classes = centers_ref.shape[0]

    @pl.when(i == 0)
    def _init():
        acc_ref[...] = jnp.zeros_like(acc_ref)

    def _compute():
        feat = feat_ref[...].astype(jnp.float32)            # (TB, D)
        centers = centers_ref[...].astype(jnp.float32)      # (C,  D)
        labels = label_ref[...]                              # (TB, 1) int32

        # One-hot gather of the per-row centers on the (otherwise idle) MXU:
        #   centers_batch[b, :] = centers[labels[b], :];  label == -1 -> zero row.
        class_ids = lax.broadcasted_iota(jnp.int32, (tb, num_classes), 1)
        onehot = (class_ids == labels).astype(jnp.float32)               # (TB, C)
        centers_batch = jnp.dot(onehot, centers,
                                preferred_element_type=jnp.float32)      # (TB, D)

        diff = feat - centers_batch
        sq = diff * diff
        if masked:
            # Ragged last tile only (static flag): rows past the true batch
            # carry the -1 sentinel. jnp.where (select, not multiply) so garbage
            # feat values (even NaN/Inf) cannot leak into the sum.
            sq = jnp.where(labels >= 0, sq, 0.0)

        # Sublane-only reduction per tile; the cross-lane reduce is deferred to
        # the wrapper over the tiny partial-sum output.
        acc_ref[...] += jnp.sum(sq, axis=0, keepdims=True)

    if needs_gate:
        # Grid is padded to num_cores * tiles_per_core >= n_tiles; skip (and do
        # not double-count) the clamped duplicate tiles past the real range.
        @pl.when(c * tiles_per_core + i < n_tiles)
        def _():
            _compute()
    else:
        _compute()

    @pl.when(i == tiles_per_core - 1)
    def _finalize():
        out_ref[...] = acc_ref[...].reshape(out_ref.shape)


def center_loss_forward(label, feat, centers, size_average=True, tile_b=None,
                        num_cores=None):
    """Pallas implementation of CenterLoss.forward (loss scalar only)."""
    batch = feat.shape[0]
    feat2d = feat.reshape(batch, -1)
    feat_dim = feat2d.shape[1]
    num_classes, center_dim = centers.shape
    if feat_dim != center_dim:
        raise ValueError(
            f"Center's dim: {center_dim} should be equal to input feature's "
            f"dim: {feat_dim}")

    feat_itemsize = jnp.dtype(feat2d.dtype).itemsize
    centers_itemsize = jnp.dtype(centers.dtype).itemsize

    # ---- Batch tile selection. HBM-bound kernel: big tiles, bounded by a VMEM
    # working-set budget that is safe on all of v5e / v6e / v7x.
    vmem_budget = 32 << 20
    if tile_b is None:
        target = (2 << 20) // max(feat_dim * 4, 1)     # ~2 MiB of f32 rows
        tile_b = max(512, min(4096, target))
    tile_b = max(8, _round_up(int(tile_b), 8))
    tile_b = min(tile_b, _round_up(batch, 8))
    while (tile_b > 8 and
           _vmem_estimate(tile_b, feat_dim, num_classes, feat_itemsize,
                          centers_itemsize) > vmem_budget):
        tile_b = max(8, _round_up(tile_b // 2, 8))

    n_tiles = (batch + tile_b - 1) // tile_b

    # ---- TensorCore split (v7x / megacore). Harmless (serialized) on 1-TC chips.
    if num_cores is None:
        num_cores = _default_num_cores()
    num_cores = max(1, min(int(num_cores), n_tiles))
    tiles_per_core = (n_tiles + num_cores - 1) // num_cores
    needs_gate = num_cores * tiles_per_core != n_tiles

    # ---- Labels: pad with the -1 sentinel up to whole tiles. feat itself is
    # NOT padded or copied; its ragged last block is masked inside the kernel.
    padded_rows = n_tiles * tile_b
    pad = padded_rows - batch
    label_i32 = label.reshape(batch).astype(jnp.int32)
    if pad:
        label_i32 = jnp.pad(label_i32, (0, pad), constant_values=-1)
    label2d = label_i32.reshape(padded_rows, 1)
    masked = pad > 0

    # ---- Index maps (block indices along the batch-tile axis).
    last_tile = n_tiles - 1
    if needs_gate:
        def row_block(c, i):
            return (jnp.minimum(c * tiles_per_core + i, last_tile), 0)
    else:
        def row_block(c, i):
            return (c * tiles_per_core + i, 0)

    kernel = functools.partial(
        _center_loss_kernel, n_tiles=n_tiles, tiles_per_core=tiles_per_core,
        masked=masked, needs_gate=needs_gate)

    est = _vmem_estimate(tile_b, feat_dim, num_classes, feat_itemsize,
                         centers_itemsize)
    vmem_limit = int(min(128 << 20, max(32 << 20, est + (8 << 20))))

    partials = pl.pallas_call(
        kernel,
        out_shape=jax.ShapeDtypeStruct((num_cores, 1, feat_dim), jnp.float32),
        grid_spec=pltpu.PrefetchScalarGridSpec(
            num_scalar_prefetch=0,
            grid=(num_cores, tiles_per_core),
            in_specs=[
                pl.BlockSpec((tile_b, 1), row_block),                        # labels
                pl.BlockSpec((tile_b, feat_dim), row_block),                 # feat tile
                pl.BlockSpec((num_classes, feat_dim), lambda c, i: (0, 0)),  # centers (resident)
            ],
            out_specs=pl.BlockSpec((1, 1, feat_dim), lambda c, i: (c, 0, 0)),
            scratch_shapes=[pltpu.VMEM((1, feat_dim), jnp.float32)],
        ),
        compiler_params=pltpu.CompilerParams(
            dimension_semantics=("parallel", "arbitrary"),
            vmem_limit_bytes=vmem_limit,
        ),
    )(label2d, feat2d, centers)

    divisor = jnp.float32(batch if size_average else 1)
    return jnp.sum(partials) / 2.0 / divisor


if __name__ == "__main__":
    key = jax.random.PRNGKey(0)
    k_feat, k_centers, k_label = jax.random.split(key, 3)

    num_classes = 10
    batch = 20
    # conv-style feature (B, C, H, W) = (20, 4, 4, 8) -> flattened feat_dim = 128
    feat = jax.random.normal(k_feat, (batch, 4, 4, 8), dtype=jnp.float32)
    feat_dim = 4 * 4 * 8

    # deterministic init mirroring nn.Parameter(torch.randn(num_classes, feat_dim))
    centers = jax.random.normal(k_centers, (num_classes, feat_dim), dtype=jnp.float32)
    label = jax.random.randint(k_label, (batch,), 0, num_classes, dtype=jnp.int32)

    # pure-JAX reference
    feat2d = feat.reshape(batch, -1)
    ref = jnp.sum((feat2d - centers[label]) ** 2) / 2.0 / batch

    # 1) default tile choice + auto core count (single ragged tile, masked path)
    loss_default = jax.block_until_ready(center_loss_forward(label, feat, centers))
    # 2) small tile -> multi-tile accumulation + ragged last tile
    loss_tiled = jax.block_until_ready(
        center_loss_forward(label, feat, centers, tile_b=8))
    # 3) explicit 2-core split (correct on any chip; exercises clamped/gated tiles)
    loss_2core = jax.block_until_ready(
        center_loss_forward(label, feat, centers, tile_b=8, num_cores=2))
    # 4) feat streamed in bf16 (source dtype), upcast inside the kernel
    feat_bf16 = feat.astype(jnp.bfloat16)
    ref_bf16 = jnp.sum(
        (feat_bf16.astype(jnp.float32).reshape(batch, -1) - centers[label]) ** 2
    ) / 2.0 / batch
    loss_bf16 = jax.block_until_ready(
        center_loss_forward(label, feat_bf16, centers, tile_b=16))

    assert jnp.allclose(loss_default, ref, rtol=1e-4, atol=1e-4), (loss_default, ref)
    assert jnp.allclose(loss_tiled, ref, rtol=1e-4, atol=1e-4), (loss_tiled, ref)
    assert jnp.allclose(loss_2core, ref, rtol=1e-4, atol=1e-4), (loss_2core, ref)
    assert jnp.allclose(loss_bf16, ref_bf16, rtol=1e-3, atol=1e-3), (loss_bf16, ref_bf16)

    print("KERNEL_OK")
</pallas_src>

<mosaic_0001>
module attributes {stable_mosaic.version = 11 : i64} {
  func.func @_center_loss_kernel(%arg0: i32, %arg1: i32, %arg2: memref<24x1xi32, #tpu.memory_space<vmem>>, %arg3: memref<24x128xf32, #tpu.memory_space<vmem>>, %arg4: memref<10x128xf32, #tpu.memory_space<vmem>>, %arg5: memref<1x1x128xf32, #tpu.memory_space<vmem>>, %arg6: memref<1x128xf32, #tpu.memory_space<vmem>>) attributes {dimension_semantics = [#tpu.dimension_semantics<parallel>, #tpu.dimension_semantics<arbitrary>], iteration_bounds = array<i64: 1, 1>, scalar_prefetch = 0 : i64, scratch_operands = 1 : i64, tpu.core_type = #tpu.core_type<tc>, window_params = [{transform_indices = @transform_0, window_bounds = array<i64: 24, 1>}, {transform_indices = @transform_1, window_bounds = array<i64: 24, 128>}, {pipeline_mode = #tpu.pipeline_mode<synchronous>, transform_indices = @transform_2, window_bounds = array<i64: 10, 128>}, {transform_indices = @transform_3, window_bounds = array<i64: 1, 1, 128>}]} {
    %c0_i32 = arith.constant 0 : i32
    %0 = arith.cmpi eq, %arg1, %c0_i32 : i32
    %1 = arith.extui %0 : i1 to i32
    %c0_i32_0 = arith.constant 0 : i32
    %2 = arith.cmpi ne, %1, %c0_i32_0 : i32
    scf.if %2 {
      %cst_15 = arith.constant 0.000000e+00 : f32
      %28 = vector.broadcast %cst_15 : f32 to vector<1x128xf32>
      %c0_16 = arith.constant 0 : index
      %c0_17 = arith.constant 0 : index
      %29 = vector.load %arg6[%c0_16, %c0_17] : memref<1x128xf32, #tpu.memory_space<vmem>>, vector<1x128xf32>
      tpu.vector_store %arg6[%c0_16, %c0_17], %28 {strides = array<i32>} : memref<1x128xf32, #tpu.memory_space<vmem>>, vector<1x128xf32>,
    } else {
    }
    %c0 = arith.constant 0 : index
    %c0_1 = arith.constant 0 : index
    %3 = vector.load %arg3[%c0, %c0_1] : memref<24x128xf32, #tpu.memory_space<vmem>>, vector<24x128xf32>
    %c0_2 = arith.constant 0 : index
    %c0_3 = arith.constant 0 : index
    %4 = vector.load %arg4[%c0_2, %c0_3] : memref<10x128xf32, #tpu.memory_space<vmem>>, vector<10x128xf32>
    %c0_4 = arith.constant 0 : index
    %c0_5 = arith.constant 0 : index
    %5 = vector.load %arg2[%c0_4, %c0_5] : memref<24x1xi32, #tpu.memory_space<vmem>>, vector<24x1xi32>
    %6 = tpu.iota {dimensions = array<i32: 1>} : vector<24x10xi32>
    %7 = vector.broadcast %5 : vector<24x1xi32> to vector<24x10xi32>
    %8 = arith.cmpi eq, %6, %7 : vector<24x10xi32>
    %9 = arith.extui %8 : vector<24x10xi1> to vector<24x10xi32>
    %10 = arith.sitofp %9 : vector<24x10xi32> to vector<24x10xf32>
    %cst = arith.constant dense<0.000000e+00> : vector<24x128xf32>
    %11 = tpu.matmul %10, %4, %cst {dimension_numbers = #tpu.dot_dimension_numbers<[1], [0], [0], [1], [0, 0, 1, 1], [], []>} : vector<24x10xf32>, vector<10x128xf32>, vector<24x128xf32> -> vector<24x128xf32>
    %12 = arith.subf %3, %11 : vector<24x128xf32>
    %13 = arith.mulf %12, %12 : vector<24x128xf32>
    %c0_i32_6 = arith.constant 0 : i32
    %14 = vector.broadcast %c0_i32_6 : i32 to vector<24x1xi32>
    %15 = arith.cmpi sge, %5, %14 : vector<24x1xi32>
    %cst_7 = arith.constant 0.000000e+00 : f32
    %16 = vector.shape_cast %15 : vector<24x1xi1> to vector<24x1xi1>
    %17 = vector.broadcast %16 : vector<24x1xi1> to vector<24x128xi1>
    %18 = vector.broadcast %cst_7 : f32 to vector<24x128xf32>
    %19 = arith.select %17, %13, %18 : vector<24x128xi1>, vector<24x128xf32>
    %c0_8 = arith.constant 0 : index
    %c0_9 = arith.constant 0 : index
    %20 = vector.load %arg6[%c0_8, %c0_9] : memref<1x128xf32, #tpu.memory_space<vmem>>, vector<1x128xf32>
    %cst_10 = arith.constant dense<0.000000e+00> : vector<128xf32>
    %21 = vector.multi_reduction <add>, %19, %cst_10 [0] : vector<24x128xf32> to vector<128xf32>
    %22 = vector.shape_cast %21 : vector<128xf32> to vector<1x128xf32>
    %23 = arith.addf %20, %22 : vector<1x128xf32>
    %c0_11 = arith.constant 0 : index
    %c0_12 = arith.constant 0 : index
    %24 = vector.load %arg6[%c0_11, %c0_12] : memref<1x128xf32, #tpu.memory_space<vmem>>, vector<1x128xf32>
    tpu.vector_store %arg6[%c0_11, %c0_12], %23 {strides = array<i32>} : memref<1x128xf32, #tpu.memory_space<vmem>>, vector<1x128xf32>,
    %c0_i32_13 = arith.constant 0 : i32
    %25 = arith.cmpi eq, %arg1, %c0_i32_13 : i32
    %26 = arith.extui %25 : i1 to i32
    %c0_i32_14 = arith.constant 0 : i32
    %27 = arith.cmpi ne, %26, %c0_i32_14 : i32
    scf.if %27 {
      %c0_15 = arith.constant 0 : index
      %c0_16 = arith.constant 0 : index
      %28 = vector.load %arg6[%c0_15, %c0_16] : memref<1x128xf32, #tpu.memory_space<vmem>>, vector<1x128xf32>
      %29 = vector.shape_cast %28 : vector<1x128xf32> to vector<1x1x128xf32>
      %c0_17 = arith.constant 0 : index
      %c0_18 = arith.constant 0 : index
      %c0_19 = arith.constant 0 : index
      %30 = vector.load %arg5[%c0_17, %c0_18, %c0_19] : memref<1x1x128xf32, #tpu.memory_space<vmem>>, vector<1x1x128xf32>
      tpu.vector_store %arg5[%c0_17, %c0_18, %c0_19], %29 {strides = array<i32>} : memref<1x1x128xf32, #tpu.memory_space<vmem>>, vector<1x1x128xf32>,
    } else {
    }
    return
  }
  func.func @transform_0(%arg0: i32, %arg1: i32) -> (i32, i32) {
    %c1_i32 = arith.constant 1 : i32
    %0 = arith.muli %arg0, %c1_i32 : i32
    %1 = arith.addi %0, %arg1 : i32
    %c0_i32 = arith.constant 0 : i32
    %c0_i32_0 = arith.constant 0 : i32
    return %1, %c0_i32 : i32, i32
  }
  func.func @transform_1(%arg0: i32, %arg1: i32) -> (i32, i32) {
    %c1_i32 = arith.constant 1 : i32
    %0 = arith.muli %arg0, %c1_i32 : i32
    %1 = arith.addi %0, %arg1 : i32
    %c0_i32 = arith.constant 0 : i32
    %c0_i32_0 = arith.constant 0 : i32
    return %1, %c0_i32 : i32, i32
  }
  func.func @transform_2(%arg0: i32, %arg1: i32) -> (i32, i32) {
    %c0_i32 = arith.constant 0 : i32
    %c0_i32_0 = arith.constant 0 : i32
    %c0_i32_1 = arith.constant 0 : i32
    return %c0_i32, %c0_i32_0 : i32, i32
  }
  func.func @transform_3(%arg0: i32, %arg1: i32) -> (i32, i32, i32) {
    %c0_i32 = arith.constant 0 : i32
    %c0_i32_0 = arith.constant 0 : i32
    %c0_i32_1 = arith.constant 0 : i32
    return %arg0, %c0_i32, %c0_i32_0 : i32, i32, i32
  }
}

</mosaic_0001>

<bundles_post_ra>
// kernel: tpu_custom_call.1
= control target key start
LH: loop header
LB: loop body
LE: loop exit
PB: predicated region body
PF: predicated region fallthrough
CT: control target
= control target key end

     0   :  { %8 = vsyncpa [#allocation4], 0  ;;  %s342_s0 = inlined_call_operand.vmem [shape: s32[24,1], index: 0, kind: input, shape index: {}]   ;;  %s343_s1 = inlined_call_operand.vmem [shape: f32[20,128], index: 1, kind: input, shape index: {}]   ;;  %s344_s2 = inlined_call_operand.hbm [shape: f32[10,128], index: 2, kind: input, shape index: {}]   ;;  %s345_s3 = inlined_call_operand.hbm [shape: f32[1,1,128], index: 3, kind: output, shape index: {}]  }
   0x1   :  { %9 = vsyncpa [#allocation5], 0  ;;  %s34_s14 = sshll.u32 %s344_s2, 4  ;;  %s292_s15 = smov [#allocation3]   ;;  %s35_s14 = int_to_ptr.hbm [resolvable:$true] %s34_s14 }
   0x2   :  { %s36_s16 = sshll.u32 %s292_s15, 4  ;;  %s293_s17 = smov 128   ;;  %s37_s16 = int_to_ptr.vmem [resolvable:$true] %s36_s16 }
   0x3   :  { %s294_s18 = smov 8  }
   0x4   :  { %42 = dma.hbm_to_vmem [thread:$0]  %s35_s14, 256, %s37_s16, [#allocation4], %s293_s17, %s293_s17, %s294_s18  }
   0x5   :  { %288 = dma.done.wait [#allocation4], 256  }
   0x6   :  { %289 = vsyncadd [#allocation4], 4294967040  ;;  %v295_v0 = vmov 0   ;;  %v296_v1 = vmov 0.0   ;;  %v87_v2 = vld [vmem:[%s342_s0 + $0x10] sm:$0xff]  ;;  %v86_v3 = vld [vmem:[%s342_s0 + $0x8] sm:$0xff]  ;;  %v88_v10 = vlaneseq }
   0x7   :  { %238 = vset.pattern.permute.xlu1 %v295_v0  ;;  %237 = vset.pattern.permute.xlu0 %v295_v0  ;;  %79 = vst [vmem:[#allocation2] sm:$0x1] %v296_v1  ;;  %v85_v4 = vld [vmem:[%s342_s0] sm:$0xff]  ;;  %v84_v6 = vld [vmem:[#allocation3 + $0x8] sm:$0x3]  ;;  %vm118_vm1 = vcmask 1041408  }
   0x8   :  { %239 = vset.pattern.permute.xlu2 %v295_v0  ;;  %97 = vperm.xlu0 %237, %v87_v2   ;;  %vm154_vm0 = vcmp.ge.s32.totalorder %v85_v4, 0  ;;  %v83_v7 = vld [vmem:[#allocation3] sm:$0xff]  ;;  %vm155_vm2 = vcmp.ge.s32.totalorder %v86_v3, 0  ;;  %vm156_vm3 = vcmp.ge.s32.totalorder %v87_v2, 0  ;;  %v89_v11 = vand.u32 127, %v88_v10  ;;  %v82_v21 = vld [vmem:[%s343_s1 + $0x10] sm:$0xff] }
   0x9   :  { %94 = vperm.xlu1 %238, %v86_v3   ;;  %v157_v5 = vsel %vm154_vm0, 1, %v295_v0  ;;  %228 = vmatpush.msk.msra.mxu2 %vm118_vm1, %v84_v6  ;;  %v158_v8 = vsel %vm155_vm2, 1, %v295_v0  ;;  %v159_v9 = vsel %vm156_vm3, 1, %v295_v0  ;;  %vm108_vm4 = vcmask 80896   ;;  %v81_v19 = vld [vmem:[%s343_s1 + $0x8] sm:$0xff]  ;;  %v80_v24 = vld [vmem:[%s343_s1] sm:$0xff] }
   0xa   :  { %227 = vmatpush.msk.msra.mxu1 %vm118_vm1, %v84_v6  ;;  %223 = vmatpush.msk.msra.mxu0 %vm118_vm1, %v84_v6  ;;  %s297_s1 = smov [#allocation6]   ;;  %s198_s5 = sshll.u32 %s345_s3, 4  ;;  %s199_s5 = int_to_ptr.hbm [resolvable:$true] %s198_s5 }
   0xb   :  { %230 = vmatpush.msra.mxu2 %v83_v7  ;;  %164 = vperm.xlu2 %239, %v158_v8   ;;  %s196_s29 = sshll.u32 %s297_s1, 4  ;;  %s197_s29 = int_to_ptr.vmem [resolvable:$true] %s196_s29 }
   0xc   :  { %229 = vmatpush.msra.mxu1 %v83_v7  ;;  %137 = vmatpush.msra.mxu0 %v83_v7 }
   0xe   :  { %v175_v43 = vld [vmem:[#allocation2] sm:$0x1] }
  0x10   :  { %91 = vperm.xlu0 %237, %v85_v4  }
  0x11   :  { %161 = vperm.xlu1 %238, %v157_v5  }
  0x13   :  { %167 = vperm.xlu2 %239, %v159_v9  }
  0x65   :  { %v165_v18 = vpop.permute.xlu2 %164 }
  0x66   :  { %vm170_vm8 = vcmp.eq.s32.totalorder %v165_v18, 1 }
  0x6d   :  { %v168_v30 = vpop.permute.xlu2 %167 }
  0x6e   :  { %vm171_vm10 = vcmp.eq.s32.totalorder %v168_v30, 1 }
  0x7a   :  { %v98_v12 = vpop.permute.xlu0 %97 }
  0x7b   :  { %v95_v13 = vpop.permute.xlu1 %94  ;;  %vm101_vm5 = vcmp.eq.s32.totalorder %v89_v11, %v98_v12 }
  0x7c   :  { %vm100_vm6 = vcmp.eq.s32.totalorder %v89_v11, %v95_v13  ;;  %v222_v14 = vsel %vm101_vm5, 1.0, %v296_v1 }
  0x7d   :  { %v221_v15 = vsel %vm100_vm6, 1.0, %v296_v1  ;;  %226 = vmatmul.msk.f32.vlgmr.msra.gmra.mxu2 %vm108_vm4, %v222_v14 }
  0x7e   :  { %225 = vmatmul.msk.f32.vlgmr.msra.gmra.mxu1 %vm108_vm4, %v221_v15 }
  0x82   :  { %v92_v16 = vpop.permute.xlu0 %91 }
  0x83   :  { %vm99_vm7 = vcmp.eq.s32.totalorder %v89_v11, %v92_v16  ;;  %v162_v27 = vpop.permute.xlu1 %161 }
  0x84   :  { %v220_v17 = vsel %vm99_vm7, 1.0, %v296_v1  ;;  %vm169_vm9 = vcmp.eq.s32.totalorder %v162_v27, 1 }
  0x85   :  { %224 = vmatmul.msk.f32.vlgmr.msra.gmra.mxu0 %vm108_vm4, %v220_v17 }
  0xfb   :  { %v142_v20 = vpop.f32.mrf.mxu1 }
  0xfc   :  { %v149_v22 = vsub.f32 %v81_v19, %v142_v20 }
  0xfe   :  { %v152_v28 = vmul.f32 %v149_v22, %v149_v22 }
 0x100   :  { %v145_v23 = vpop.f32.mrf.mxu2  ;;  %v173_v33 = vsel %vm170_vm8, %v152_v28, 0.0 }
 0x101   :  { %v150_v25 = vsub.f32 %v82_v21, %v145_v23 }
 0x102   :  { %v139_v26 = vpop.f32.mrf.mxu0 }
 0x103   :  { %v148_v29 = vsub.f32 %v80_v24, %v139_v26  ;;  %v153_v31 = vmul.f32 %v150_v25, %v150_v25 }
 0x105   :  { %v151_v32 = vmul.f32 %v148_v29, %v148_v29  ;;  %v174_v36 = vsel %vm171_vm10, %v153_v31, 0.0 }
 0x107   :  { %v172_v34 = vsel %vm169_vm9, %v151_v32, 0.0 }
 0x108   :  { %v176_v35 = vadd.f32 %v173_v33, %v172_v34 }
 0x10a   :  { %v177_v37 = vadd.f32 %v176_v35, %v174_v36 }
 0x10c   :  { %v178_v38 = vrot.slane %v177_v37, 4 }
 0x10e   :  { %v179_v39 = vadd.f32 %v178_v38, %v177_v37 }
 0x110   :  { %v180_v40 = vrot.slane %v179_v39, 2 }
 0x112   :  { %v181_v41 = vadd.f32 %v180_v40, %v179_v39 }
 0x114   :  { %v182_v42 = vrot.slane %v181_v41, 1 }
 0x116   :  { %v183_v44 = vadd.f32 %v182_v42, %v181_v41 }
 0x118   :  { %v184_v45 = vadd.f32 %v183_v44, %v175_v43 }
 0x11a   :  { %185 = vst [vmem:[#allocation2] sm:$0x1] %v184_v45 }
 0x121   :  { %v189_v46 = vld [vmem:[#allocation2] sm:$0x1] }
 0x122   :  { %190 = vst [vmem:[#allocation6] sm:$0x1] %v189_v46 }
 0x123   :  { %201 = dma.vmem_to_hbm [thread:$0]  %s197_s29, 16, %s199_s5, [#allocation5]  }
 0x124   :  { %290 = dma.done.wait [#allocation5], 16  }
 0x125   :  { %291 = vsyncadd [#allocation5], 4294967280 }
 0x126   :  { %206 = vsyncpa [#allocation4], 1 }
 0x127   :  { %207 = vsyncpa [#allocation5], 1 }

</bundles_post_ra>
